<compile_context>
chip_gen: v7x
topology: tpu7x:2x2x1
jax: 0.10.0
libtpu: 0.0.40
codegen_flags: <defaults>
</compile_context>

<pallas_src>
import math

import jax
import jax.numpy as jnp
from jax.experimental import pallas as pl
from jax.experimental.pallas import tpu as pltpu

MIN_LOG_STD = math.log(1e-6)


def _round_up(n, m):
    return ((n + m - 1) // m) * m


def _pad2d(a, rows, cols):
    r, c = a.shape
    if r == rows and c == cols:
        return a
    return jnp.pad(a, ((0, rows - r), (0, cols - c)))


def _align_hidden(h):
    # 256-aligned K/N fills the v6e/v7x 2x256x256 MXU; 128 is enough below that.
    return _round_up(h, 256) if h >= 256 else _round_up(h, 128)


def _choose_tm(batch):
    """Batch-tile rows: single tile for small B, >=2 grid steps for large B."""
    b8 = _round_up(max(batch, 1), 8)
    if b8 <= 256:
        return b8                       # one grid step; nothing to split
    # At least two steps so v7x's two TensorCores both get work; cap tile size.
    return min(1024, _round_up(-(-b8 // 2), 8))


# ---------------------------------------------------------------------------
# Kernel body: one batch tile of the 3-layer MLP.  Weights are VMEM-resident
# (constant block index); matmuls in `matmul_dtype` with f32 accumulation.
# ---------------------------------------------------------------------------
def _actor_kernel(x_ref, w1_ref, w2_ref, w3_ref, bias_ref, mu_ref):
    h_pad = w1_ref.shape[1]
    o_pad = w3_ref.shape[1]
    mdt = w1_ref.dtype                      # matmul dtype (bf16 or f32)

    # Packed bias rows (f32 slab): row 0 = b1, row 1 = b2, row 2 = b3.
    b1 = bias_ref[0:1, :h_pad]
    b2 = bias_ref[1:2, :h_pad]
    b3 = bias_ref[2:3, :o_pad]

    # Layer 1: Linear + ReLU (MXU matmul, f32 epilogue on the VPU).
    x = x_ref[...].astype(mdt)
    h1 = jnp.dot(x, w1_ref[...], preferred_element_type=jnp.float32)
    h1 = jnp.maximum(h1 + b1, 0.0)

    # Layer 2: Linear + ReLU.
    h2 = jnp.dot(h1.astype(mdt), w2_ref[...], preferred_element_type=jnp.float32)
    h2 = jnp.maximum(h2 + b2, 0.0)

    # Output head: mu (lane-dense padded store; real columns sliced by caller).
    mu = jnp.dot(h2.astype(mdt), w3_ref[...], preferred_element_type=jnp.float32)
    mu_ref[...] = (mu + b3).astype(mu_ref.dtype)


# ---------------------------------------------------------------------------
# One-time parameter preparation (hoisted out of the per-call hot path).
# ---------------------------------------------------------------------------
def prepare_actor_params(params, matmul_dtype=jnp.bfloat16):
    D, H = params["w1"].shape
    O = params["w3"].shape[1]

    H_pad = _align_hidden(H)
    O_pad = _round_up(O, 128)
    P = max(H_pad, O_pad)

    # Zero padding of the hidden/output dims is numerically exact for
    # linear + ReLU chains.  K of the first matmul stays at the true D
    # (matches the unpadded x lane dim, so x needs no per-call padding).
    w1_p = _pad2d(params["w1"], D, H_pad).astype(matmul_dtype)
    w2_p = _pad2d(params["w2"], H_pad, H_pad).astype(matmul_dtype)
    w3_p = _pad2d(params["w3"], H_pad, O_pad).astype(matmul_dtype)

    # Pack the three bias vectors into one (8, P) f32 slab -> a single DMA.
    bias_pack = jnp.zeros((8, P), dtype=jnp.float32)
    bias_pack = bias_pack.at[0, :H].set(params["b1"].astype(jnp.float32))
    bias_pack = bias_pack.at[1, :H].set(params["b2"].astype(jnp.float32))
    bias_pack = bias_pack.at[2, :O].set(params["b3"].astype(jnp.float32))

    # scale is input-independent -> compute once here (f32, like the module).
    scale = jnp.exp(jnp.maximum(params["log_sigma"].astype(jnp.float32),
                                MIN_LOG_STD))

    return {
        "w1": w1_p, "w2": w2_p, "w3": w3_p,
        "bias": bias_pack, "scale": scale,
        "dims": (D, H, O, H_pad, O_pad, P),
    }


# ---------------------------------------------------------------------------
# Forward pass.
# ---------------------------------------------------------------------------
def actor_forward(x_tuple, prepared):
    """Pallas equivalent of ActorNetwork.forward.

    x_tuple:  (x, (hx, cx)) with x of shape (batch, input_dim)
    prepared: output of prepare_actor_params(params)
    returns:  (mu, scale, (hx, cx))
    """
    x, (hx, cx) = x_tuple
    B, D = x.shape
    D0, H, O, H_pad, O_pad, P = prepared["dims"]
    assert D == D0, f"input dim mismatch: {D} vs {D0}"

    TM = _choose_tm(B)
    grid = (pl.cdiv(B, TM),)

    # Explicit scoped-VMEM budget (binding on v5e's 16 MiB default and v7x's
    # 64 MiB physical VMEM at large H).
    mdt_bytes = jnp.dtype(prepared["w1"].dtype).itemsize
    io_bytes = jnp.dtype(x.dtype).itemsize
    weight_bytes = (D * H_pad + H_pad * H_pad + H_pad * O_pad) * mdt_bytes * 2
    stream_bytes = (TM * D + TM * O_pad) * io_bytes * 2
    interm_bytes = (2 * TM * H_pad + TM * O_pad) * 4
    est = weight_bytes + stream_bytes + interm_bytes + 8 * P * 4 * 2
    vmem_limit = int(min(48 << 20, max(2 * est + (2 << 20), 16 << 20)))

    mu_pad = pl.pallas_call(
        _actor_kernel,
        out_shape=jax.ShapeDtypeStruct((B, O_pad), x.dtype),
        grid=grid,
        in_specs=[
            pl.BlockSpec((TM, D), lambda i: (i, 0)),        # x tile (boundary-clipped)
            pl.BlockSpec((D, H_pad), lambda i: (0, 0)),     # W1 (VMEM-resident)
            pl.BlockSpec((H_pad, H_pad), lambda i: (0, 0)), # W2 (VMEM-resident)
            pl.BlockSpec((H_pad, O_pad), lambda i: (0, 0)), # W3 (VMEM-resident)
            pl.BlockSpec((8, P), lambda i: (0, 0)),         # packed biases (f32)
        ],
        out_specs=pl.BlockSpec((TM, O_pad), lambda i: (i, 0)),
        compiler_params=pltpu.CompilerParams(
            dimension_semantics=("parallel",),
            vmem_limit_bytes=vmem_limit),
    )(x, prepared["w1"], prepared["w2"], prepared["w3"], prepared["bias"])

    # Slice to the module's (B, O) contract; downstream consumers that can
    # accept the 128-lane padded mu should use mu_pad directly instead.
    mu = mu_pad[:, :O]
    return mu, prepared["scale"], (hx, cx)


# ---------------------------------------------------------------------------
# Reference + deterministic init (shapes match the nn.Module __init__).
# ---------------------------------------------------------------------------
def init_params(key, input_dim, n_hidden, output_dim, dtype=jnp.float32):
    k1, k2, k3, k4, k5, k6 = jax.random.split(key, 6)
    s = 0.1
    return {
        # stored transposed (in, out) relative to PyTorch's (out, in)
        "w1": (s * jax.random.normal(k1, (input_dim, n_hidden))).astype(dtype),
        "b1": (s * jax.random.normal(k2, (n_hidden,))).astype(dtype),
        "w2": (s * jax.random.normal(k3, (n_hidden, n_hidden))).astype(dtype),
        "b2": (s * jax.random.normal(k4, (n_hidden,))).astype(dtype),
        "w3": (s * jax.random.normal(k5, (n_hidden, output_dim))).astype(dtype),
        "b3": (s * jax.random.normal(k6, (output_dim,))).astype(dtype),
        # sigma parameter is filled with log(1.0) = 0.0 in the module
        "log_sigma": jnp.full((output_dim,), math.log(1.0), dtype=dtype),
    }


def actor_forward_ref(x_tuple, params):
    x, (hx, cx) = x_tuple
    h1 = jax.nn.relu(x @ params["w1"] + params["b1"])
    h2 = jax.nn.relu(h1 @ params["w2"] + params["b2"])
    mu = h2 @ params["w3"] + params["b3"]
    scale = jnp.exp(jnp.maximum(params["log_sigma"], MIN_LOG_STD))
    return mu, scale, (hx, cx)


if __name__ == "__main__":
    key = jax.random.PRNGKey(0)
    kx, kh, kc, kp, kx2 = jax.random.split(key, 5)

    batch, input_dim, n_hidden, output_dim = 4, 16, 32, 8

    x = jax.random.normal(kx, (batch, input_dim), dtype=jnp.float32)
    hx = jax.random.normal(kh, (batch, n_hidden), dtype=jnp.float32)
    cx = jax.random.normal(kc, (batch, n_hidden), dtype=jnp.float32)
    params = init_params(kp, input_dim, n_hidden, output_dim)

    # --- f32 matmul path: exact check against the pure-JAX reference -------
    prep_f32 = prepare_actor_params(params, matmul_dtype=jnp.float32)
    mu, scale, (hx_o, cx_o) = actor_forward((x, (hx, cx)), prep_f32)
    jax.block_until_ready((mu, scale, hx_o, cx_o))

    mu_ref, scale_ref, _ = actor_forward_ref((x, (hx, cx)), params)
    assert mu.shape == (batch, output_dim)
    assert scale.shape == (output_dim,)
    assert jnp.allclose(mu, mu_ref, atol=1e-5, rtol=1e-5)
    assert jnp.allclose(scale, scale_ref, atol=1e-6)
    assert jnp.array_equal(hx_o, hx) and jnp.array_equal(cx_o, cx)

    # --- bf16 matmul path (default, MXU-native): loose-tolerance check -----
    prep_bf16 = prepare_actor_params(params)            # matmul_dtype=bf16
    mu_b, scale_b, _ = actor_forward((x, (hx, cx)), prep_bf16)
    jax.block_until_ready((mu_b, scale_b))
    assert jnp.allclose(mu_b, mu_ref, atol=3e-2, rtol=3e-2)
    assert jnp.allclose(scale_b, scale_ref, atol=1e-6)

    # --- larger, non-divisible batch: exercises multi-step grid + boundary --
    big_b = 300
    x_big = jax.random.normal(kx2, (big_b, input_dim), dtype=jnp.float32)
    hx_b = jnp.zeros((big_b, n_hidden), jnp.float32)
    cx_b = jnp.zeros((big_b, n_hidden), jnp.float32)
    mu_big, _, _ = actor_forward((x_big, (hx_b, cx_b)), prep_bf16)
    jax.block_until_ready(mu_big)
    mu_big_ref, _, _ = actor_forward_ref((x_big, (hx_b, cx_b)), params)
    assert mu_big.shape == (big_b, output_dim)
    assert jnp.allclose(mu_big, mu_big_ref, atol=3e-2, rtol=3e-2)

    print("KERNEL_OK")
</pallas_src>

<mosaic_0001>
module attributes {stable_mosaic.version = 11 : i64} {
  func.func @_actor_kernel(%arg0: i32, %arg1: memref<8x16xf32, #tpu.memory_space<vmem>>, %arg2: memref<16x128xf32, #tpu.memory_space<vmem>>, %arg3: memref<128x128xf32, #tpu.memory_space<vmem>>, %arg4: memref<128x128xf32, #tpu.memory_space<vmem>>, %arg5: memref<8x128xf32, #tpu.memory_space<vmem>>, %arg6: memref<8x128xf32, #tpu.memory_space<vmem>>) attributes {dimension_semantics = [#tpu.dimension_semantics<parallel>], iteration_bounds = array<i64: 1>, scalar_prefetch = 0 : i64, scratch_operands = 0 : i64, tpu.core_type = #tpu.core_type<tc>, window_params = [{transform_indices = @transform_0, window_bounds = array<i64: 8, 16>}, {pipeline_mode = #tpu.pipeline_mode<synchronous>, transform_indices = @transform_1, window_bounds = array<i64: 16, 128>}, {pipeline_mode = #tpu.pipeline_mode<synchronous>, transform_indices = @transform_2, window_bounds = array<i64: 128, 128>}, {pipeline_mode = #tpu.pipeline_mode<synchronous>, transform_indices = @transform_3, window_bounds = array<i64: 128, 128>}, {pipeline_mode = #tpu.pipeline_mode<synchronous>, transform_indices = @transform_4, window_bounds = array<i64: 8, 128>}, {transform_indices = @transform_5, window_bounds = array<i64: 8, 128>}]} {
    %c0 = arith.constant 0 : index
    %c0_0 = arith.constant 0 : index
    %0 = vector.load %arg5[%c0, %c0_0] : memref<8x128xf32, #tpu.memory_space<vmem>>, vector<1x128xf32>
    %c1 = arith.constant 1 : index
    %c0_1 = arith.constant 0 : index
    %1 = vector.load %arg5[%c1, %c0_1] : memref<8x128xf32, #tpu.memory_space<vmem>>, vector<1x128xf32>
    %c2 = arith.constant 2 : index
    %c0_2 = arith.constant 0 : index
    %2 = vector.load %arg5[%c2, %c0_2] : memref<8x128xf32, #tpu.memory_space<vmem>>, vector<1x128xf32>
    %c0_3 = arith.constant 0 : index
    %c0_4 = arith.constant 0 : index
    %3 = vector.load %arg1[%c0_3, %c0_4] : memref<8x16xf32, #tpu.memory_space<vmem>>, vector<8x16xf32>
    %c0_5 = arith.constant 0 : index
    %c0_6 = arith.constant 0 : index
    %4 = vector.load %arg2[%c0_5, %c0_6] : memref<16x128xf32, #tpu.memory_space<vmem>>, vector<16x128xf32>
    %cst = arith.constant dense<0.000000e+00> : vector<8x128xf32>
    %5 = tpu.matmul %3, %4, %cst {dimension_numbers = #tpu.dot_dimension_numbers<[1], [0], [0], [1], [0, 0, 1, 1], [], []>} : vector<8x16xf32>, vector<16x128xf32>, vector<8x128xf32> -> vector<8x128xf32>
    %6 = vector.broadcast %0 : vector<1x128xf32> to vector<8x128xf32>
    %7 = arith.addf %5, %6 : vector<8x128xf32>
    %cst_7 = arith.constant 0.000000e+00 : f32
    %8 = vector.broadcast %cst_7 : f32 to vector<8x128xf32>
    %9 = arith.maximumf %7, %8 : vector<8x128xf32>
    %c0_8 = arith.constant 0 : index
    %c0_9 = arith.constant 0 : index
    %10 = vector.load %arg3[%c0_8, %c0_9] : memref<128x128xf32, #tpu.memory_space<vmem>>, vector<128x128xf32>
    %cst_10 = arith.constant dense<0.000000e+00> : vector<8x128xf32>
    %11 = tpu.matmul %9, %10, %cst_10 {dimension_numbers = #tpu.dot_dimension_numbers<[1], [0], [0], [1], [0, 0, 1, 1], [], []>} : vector<8x128xf32>, vector<128x128xf32>, vector<8x128xf32> -> vector<8x128xf32>
    %12 = vector.broadcast %1 : vector<1x128xf32> to vector<8x128xf32>
    %13 = arith.addf %11, %12 : vector<8x128xf32>
    %cst_11 = arith.constant 0.000000e+00 : f32
    %14 = vector.broadcast %cst_11 : f32 to vector<8x128xf32>
    %15 = arith.maximumf %13, %14 : vector<8x128xf32>
    %c0_12 = arith.constant 0 : index
    %c0_13 = arith.constant 0 : index
    %16 = vector.load %arg4[%c0_12, %c0_13] : memref<128x128xf32, #tpu.memory_space<vmem>>, vector<128x128xf32>
    %cst_14 = arith.constant dense<0.000000e+00> : vector<8x128xf32>
    %17 = tpu.matmul %15, %16, %cst_14 {dimension_numbers = #tpu.dot_dimension_numbers<[1], [0], [0], [1], [0, 0, 1, 1], [], []>} : vector<8x128xf32>, vector<128x128xf32>, vector<8x128xf32> -> vector<8x128xf32>
    %18 = vector.broadcast %2 : vector<1x128xf32> to vector<8x128xf32>
    %19 = arith.addf %17, %18 : vector<8x128xf32>
    %c0_15 = arith.constant 0 : index
    %c0_16 = arith.constant 0 : index
    %20 = vector.load %arg6[%c0_15, %c0_16] : memref<8x128xf32, #tpu.memory_space<vmem>>, vector<8x128xf32>
    tpu.vector_store %arg6[%c0_15, %c0_16], %19 {strides = array<i32>} : memref<8x128xf32, #tpu.memory_space<vmem>>, vector<8x128xf32>,
    return
  }
  func.func @transform_0(%arg0: i32) -> (i32, i32) {
    %c0_i32 = arith.constant 0 : i32
    %c0_i32_0 = arith.constant 0 : i32
    return %arg0, %c0_i32 : i32, i32
  }
  func.func @transform_1(%arg0: i32) -> (i32, i32) {
    %c0_i32 = arith.constant 0 : i32
    %c0_i32_0 = arith.constant 0 : i32
    %c0_i32_1 = arith.constant 0 : i32
    return %c0_i32, %c0_i32_0 : i32, i32
  }
  func.func @transform_2(%arg0: i32) -> (i32, i32) {
    %c0_i32 = arith.constant 0 : i32
    %c0_i32_0 = arith.constant 0 : i32
    %c0_i32_1 = arith.constant 0 : i32
    return %c0_i32, %c0_i32_0 : i32, i32
  }
  func.func @transform_3(%arg0: i32) -> (i32, i32) {
    %c0_i32 = arith.constant 0 : i32
    %c0_i32_0 = arith.constant 0 : i32
    %c0_i32_1 = arith.constant 0 : i32
    return %c0_i32, %c0_i32_0 : i32, i32
  }
  func.func @transform_4(%arg0: i32) -> (i32, i32) {
    %c0_i32 = arith.constant 0 : i32
    %c0_i32_0 = arith.constant 0 : i32
    %c0_i32_1 = arith.constant 0 : i32
    return %c0_i32, %c0_i32_0 : i32, i32
  }
  func.func @transform_5(%arg0: i32) -> (i32, i32) {
    %c0_i32 = arith.constant 0 : i32
    %c0_i32_0 = arith.constant 0 : i32
    return %arg0, %c0_i32 : i32, i32
  }
}

</mosaic_0001>

<bundles_post_ra>
// kernel: tpu_custom_call.1
= control target key start
LH: loop header
LB: loop body
LE: loop exit
PB: predicated region body
PF: predicated region fallthrough
CT: control target
= control target key end

     0   :  { %10 = vsyncpa [#allocation3], 0  ;;  %s814_s0 = inlined_call_operand.hbm [shape: f32[4,16], index: 0, kind: input, shape index: {}]   ;;  %s815_s1 = inlined_call_operand.hbm [shape: f32[16,128], index: 1, kind: input, shape index: {}]   ;;  %s816_s2 = inlined_call_operand.hbm [shape: f32[128,128], index: 2, kind: input, shape index: {}]   ;;  %s817_s3 = inlined_call_operand.hbm [shape: f32[128,128], index: 3, kind: input, shape index: {}]   ;;  %s818_s4 = inlined_call_operand.vmem [shape: f32[8,128], index: 4, kind: input, shape index: {}]   ;;  %s819_s5 = inlined_call_operand.hbm [shape: f32[4,128], index: 5, kind: output, shape index: {}]  }
   0x1   :  { %11 = vsyncpa [#allocation6], 0 }
   0x2   :  { %12 = vsyncpa [#allocation9], 0 }
   0x3   :  { %13 = vsyncpa [#allocation4], 0 }
   0x4   :  { %18 = vsyncadd [#allocation3], 64  ;;  %s661_s18 = smov [#allocation5]   ;;  %s543_s22 = scalar_lea.hbm %s815_s1, 256 }
   0x5   :  { %s31_s19 = sshll.u32 %s661_s18, 4  ;;  %p544_p0 = scmp.ne.s32.totalorder %s815_s1, %s543_s22  ;;  %s32_s19 = int_to_ptr.vmem [resolvable:$true] %s31_s19 }
   0x6   :  { %p547_p1 = scmp.lt.u32.totalorder %s543_s22, %s815_s1 }
   0x8   :  { %p549_p2 = pnand %p547_p1, %p544_p0 }
   0xa   :  { %552 = shalt.err (!%p549_p2)
}
   0xb   :  { %s553_s27 = scalar_lea.vmem %s32_s19, 256  ;;  %p558_p4 = scmp.lt.s32.totalorder %s32_s19, %s32_s19 }
   0xc   :  { %p554_p3 = scmp.ne.s32.totalorder %s32_s19, %s553_s27  ;;  %p559_p5 = scmp.lt.s32.totalorder %s553_s27, %s553_s27 }
   0xe   :  { %p560_p6 = por %p559_p5, %p558_p4 }
  0x10   :  { %p561_p7 = pnand %p560_p6, %p554_p3 }
  0x12   :  { %564 = shalt.err (!%p561_p7)
}
  0x13   :  { %s662_s28 = smov 128   ;;  %s663_s29 = smov 8  }
  0x14   :  { %37 = dma.hbm_to_vmem [thread:$0]  %s815_s1, 256, %s32_s19, [#allocation6], %s662_s28, %s662_s28, %s663_s29  }
  0x15   :  { %s664_s7 = smov [#allocation2]   ;;  %s565_s11 = scalar_lea.hbm %s814_s0, 64 }
  0x16   :  { %s19_s8 = sshll.u32 %s664_s7, 4  ;;  %p566_p8 = scmp.ne.s32.totalorder %s814_s0, %s565_s11  ;;  %s20_s8 = int_to_ptr.vmem [resolvable:$true] %s19_s8 }
  0x17   :  { %p569_p9 = scmp.lt.u32.totalorder %s565_s11, %s814_s0 }
  0x19   :  { %p571_p10 = pnand %p569_p9, %p566_p8 }
  0x1b   :  { %574 = shalt.err (!%p571_p10)
}
  0x1c   :  { %s575_s16 = scalar_lea.vmem %s20_s8, 64  ;;  %s579_s1 = scalar_lea.vmem %s20_s8, 128 }
  0x1d   :  { %p576_p11 = scmp.ne.s32.totalorder %s20_s8, %s575_s16  ;;  %p580_p12 = scmp.lt.s32.totalorder %s20_s8, %s20_s8 }
  0x1e   :  { %p581_p13 = scmp.lt.s32.totalorder %s579_s1, %s575_s16 }
  0x20   :  { %p582_p0 = por %p581_p13, %p580_p12 }
  0x22   :  { %p583_p1 = pnand %p582_p0, %p576_p11 }
  0x24   :  { %586 = shalt.err (!%p583_p1)
}
  0x25   :  { %s665_s17 = smov 64   ;;  %s666_s18 = smov 4  }
  0x26   :  { %25 = dma.hbm_to_vmem [thread:$0]  %s814_s0, 64, %s20_s8, [#allocation3], %s665_s17, %s665_s17, %s666_s18  }
  0x27   :  { %s667_s21 = smov [#allocation7]   ;;  %s668_s23 = smov [#allocation8]  }
  0x28   :  { %s43_s22 = sshll.u32 %s667_s21, 4  ;;  %s55_s24 = sshll.u32 %s668_s23, 4  ;;  %s44_s22 = int_to_ptr.vmem [resolvable:$true] %s43_s22  ;;  %s733_s24 = int_to_ptr.vmem [resolvable:$true] %s55_s24 }
  0x29   :  { %s587_s27 = scalar_lea.hbm %s816_s2, 2048 }
  0x2a   :  { %p588_p2 = scmp.ne.s32.totalorder %s816_s2, %s587_s27  ;;  %p591_p3 = scmp.lt.u32.totalorder %s587_s27, %s816_s2 }
  0x2c   :  { %p593_p4 = pnand %p591_p3, %p588_p2 }
  0x2e   :  { %596 = shalt.err (!%p593_p4)
}
  0x2f   :  { %s597_s0 = scalar_lea.vmem %s44_s22, 2048  ;;  %p602_p6 = scmp.lt.s32.totalorder %s44_s22, %s44_s22 }
  0x30   :  { %p598_p5 = scmp.ne.s32.totalorder %s44_s22, %s597_s0  ;;  %p603_p7 = scmp.lt.s32.totalorder %s597_s0, %s597_s0 }
  0x32   :  { %p604_p8 = por %p603_p7, %p602_p6 }
  0x34   :  { %p605_p9 = pnand %p604_p8, %p598_p5 }
  0x36   :  { %608 = shalt.err (!%p605_p9)
}
  0x37   :  { %49 = dma.hbm_to_vmem [thread:$0]  %s816_s2, 2048, %s44_s22, [#allocation6], %s662_s28, %s662_s28, %s663_s29  }
  0x38   :  { %s609_s13 = scalar_lea.hbm %s817_s3, 2048 }
  0x39   :  { %p610_p10 = scmp.ne.s32.totalorder %s817_s3, %s609_s13  ;;  %p613_p11 = scmp.lt.u32.totalorder %s609_s13, %s817_s3 }
  0x3b   :  { %p615_p12 = pnand %p613_p11, %p610_p10 }
  0x3d   :  { %618 = shalt.err (!%p615_p12)
}
  0x3e   :  { %s619_s19 = scalar_lea.vmem %s733_s24, 2048  ;;  %p624_p0 = scmp.lt.s32.totalorder %s733_s24, %s733_s24 }
  0x3f   :  { %p620_p13 = scmp.ne.s32.totalorder %s733_s24, %s619_s19  ;;  %p625_p1 = scmp.lt.s32.totalorder %s619_s19, %s619_s19 }
  0x41   :  { %p626_p2 = por %p625_p1, %p624_p0 }
  0x43   :  { %p627_p3 = pnand %p626_p2, %p620_p13 }
  0x45   :  { %630 = shalt.err (!%p627_p3)
}
  0x46   :  { %61 = dma.hbm_to_vmem [thread:$0]  %s817_s3, 2048, %s733_s24, [#allocation9], %s662_s28, %s662_s28, %s663_s29  }
  0x47   :  { %653 = dma.done.wait [#allocation3], 128  }
  0x48   :  { %654 = vsyncadd [#allocation3], 4294967168 }
  0x49   :  { %655 = dma.done.wait [#allocation6], 2304  }
  0x4a   :  { %656 = vsyncadd [#allocation6], 4294964992 }
  0x4b   :  { %657 = dma.done.wait [#allocation9], 2048  }
  0x4c   :  { %658 = vsyncadd [#allocation9], 4294965248  ;;  %v669_v0 = vmov 0.0|0.0   ;;  %vm670_vm0 = vmmov 0   ;;  %v671_v1 = vmov 0.0   ;;  %v80_v2 = vld [vmem:[#allocation5] sm:$0xff] }
  0x4d   :  { %480 = vmatprep.subr.bf16.mxu0 %v669_v0  ;;  %407 = vmatprep.mubr.msk.f32.mxu0 %vm670_vm0, %v671_v1  ;;  %v81_v3 = vld [vmem:[#allocation5 + $0x8] sm:$0xff]  ;;  %v161_v5 = vld [vmem:[#allocation7] sm:$0xff]  ;;  %v162_v6 = vld [vmem:[#allocation7 + $0x8] sm:$0xff]  ;;  %vm86_vm1 = vcmask 130048  }
  0x4e   :  { %483 = vmatprep.subr.bf16.mxu1 %v669_v0  ;;  %442 = vmatprep.mubr.msk.f32.mxu1 %vm670_vm0, %v671_v1  ;;  %v481_v4 = vpack.c.bf16 %v81_v3, %v80_v2  ;;  %v163_v7 = vld [vmem:[#allocation7 + $0x10] sm:$0xff]  ;;  %v484_v8 = vpack.c.bf16 %v162_v6, %v161_v5  ;;  %v164_v9 = vld [vmem:[#allocation7 + $0x18] sm:$0xff]  ;;  %v79_v10 = vld [vmem:[#allocation2] sm:$0xff] }
  0x4f   :  { %v487_v11 = vpack.c.bf16 %v164_v9, %v163_v7  ;;  %v165_v12 = vld [vmem:[#allocation7 + $0x20] sm:$0xff]  ;;  %v166_v13 = vld [vmem:[#allocation7 + $0x28] sm:$0xff]  ;;  %v167_v15 = vld [vmem:[#allocation7 + $0x30] sm:$0xff] }
  0x50   :  { %482 = vmatpush3.bf16.msra.mxu0 %v481_v4  ;;  %485 = vmatpush3.bf16.msra.mxu1 %v484_v8  ;;  %v490_v14 = vpack.c.bf16 %v166_v13, %v165_v12  ;;  %v168_v16 = vld [vmem:[#allocation7 + $0x38] sm:$0xff]  ;;  %v169_v18 = vld [vmem:[#allocation7 + $0x40] sm:$0xff]  ;;  %v170_v19 = vld [vmem:[#allocation7 + $0x48] sm:$0xff] }
  0x51   :  { %507 = vmatprep.subr.bf16.mxu0 %v669_v0  ;;  %486 = vmatprep.subr.bf16.mxu1 %v669_v0  ;;  %v493_v17 = vpack.c.bf16 %v168_v16, %v167_v15  ;;  %v496_v20 = vpack.c.bf16 %v170_v19, %v169_v18  ;;  %v171_v21 = vld [vmem:[#allocation7 + $0x50] sm:$0xff]  ;;  %v172_v22 = vld [vmem:[#allocation7 + $0x58] sm:$0xff]  ;;  %v173_v24 = vld [vmem:[#allocation7 + $0x60] sm:$0xff] }
  0x52   :  { %v499_v23 = vpack.c.bf16 %v172_v22, %v171_v21  ;;  %v174_v25 = vld [vmem:[#allocation7 + $0x68] sm:$0xff]  ;;  %v175_v27 = vld [vmem:[#allocation7 + $0x70] sm:$0xff]  ;;  %v176_v28 = vld [vmem:[#allocation7 + $0x78] sm:$0xff] }
  0x53   :  { %408 = vmatmul.mubr.msk.f32.vlgmr.msra.gmra.mrb[0].mxu0 %vm86_vm1, %v79_v10  ;;  %v502_v26 = vpack.c.bf16 %v174_v25, %v173_v24  ;;  %v505_v29 = vpack.c.bf16 %v176_v28, %v175_v27  ;;  %v252_v30 = vld [vmem:[#allocation8] sm:$0xff]  ;;  %v253_v31 = vld [vmem:[#allocation8 + $0x8] sm:$0xff]  ;;  %v254_v32 = vld [vmem:[#allocation8 + $0x10] sm:$0xff] }
  0x54   :  { %477 = vmatprep.mubr.msk.f32.mxu0 %vm670_vm0, %v671_v1  ;;  %488 = vmatpush3.bf16.msra.mxu1 %v487_v11  ;;  %v508_v33 = vpack.c.bf16 %v253_v31, %v252_v30  ;;  %v255_v34 = vld [vmem:[#allocation8 + $0x18] sm:$0xff]  ;;  %v256_v36 = vld [vmem:[#allocation8 + $0x20] sm:$0xff]  ;;  %v257_v37 = vld [vmem:[#allocation8 + $0x28] sm:$0xff] }
  0x55   :  { %489 = vmatprep.subr.bf16.mxu1 %v669_v0  ;;  %v511_v35 = vpack.c.bf16 %v255_v34, %v254_v32  ;;  %v514_v38 = vpack.c.bf16 %v257_v37, %v256_v36  ;;  %v258_v39 = vld [vmem:[#allocation8 + $0x30] sm:$0xff]  ;;  %v259_v40 = vld [vmem:[#allocation8 + $0x38] sm:$0xff]  ;;  %v260_v42 = vld [vmem:[#allocation8 + $0x40] sm:$0xff] }
  0x56   :  { %509 = vmatpush3.bf16.msra.mxu0 %v508_v33  ;;  %v517_v41 = vpack.c.bf16 %v259_v40, %v258_v39  ;;  %v261_v43 = vld [vmem:[#allocation8 + $0x48] sm:$0xff]  ;;  %v262_v45 = vld [vmem:[#allocation8 + $0x50] sm:$0xff]  ;;  %v263_v46 = vld [vmem:[#allocation8 + $0x58] sm:$0xff] }
  0x57   :  { %510 = vmatprep.subr.bf16.mxu0 %v669_v0  ;;  %v520_v44 = vpack.c.bf16 %v261_v43, %v260_v42  ;;  %v523_v47 = vpack.c.bf16 %v263_v46, %v262_v45  ;;  %v264_v48 = vld [vmem:[#allocation8 + $0x60] sm:$0xff]  ;;  %v265_v49 = vld [vmem:[#allocation8 + $0x68] sm:$0xff]  ;;  %v266_v56 = vld [vmem:[#allocation8 + $0x70] sm:$0xff] }
  0x58   :  { %491 = vmatpush3.bf16.msra.mxu1 %v490_v14  ;;  %v526_v50 = vpack.c.bf16 %v265_v49, %v264_v48  ;;  %v362_v51 = vld [vmem:[%s818_s4] ss:$0 sm:$0xff]  ;;  %v267_v57 = vld [vmem:[#allocation8 + $0x78] sm:$0xff]  ;;  %v364_v59 = vld [vmem:[%s818_s4 + $0x1] ss:$0 sm:$0xff] }
  0x59   :  { %492 = vmatprep.subr.bf16.mxu1 %v669_v0  ;;  %v529_v58 = vpack.c.bf16 %v267_v57, %v266_v56 }
  0x5a   :  { %512 = vmatpush3.bf16.msra.mxu0 %v511_v35 }
  0x5b   :  { %513 = vmatprep.subr.bf16.mxu0 %v669_v0 }
  0x5c   :  { %494 = vmatpush3.bf16.msra.mxu1 %v493_v17 }
  0x5d   :  { %495 = vmatprep.subr.bf16.mxu1 %v669_v0 }
  0x5e   :  { %515 = vmatpush3.bf16.msra.mxu0 %v514_v38 }
  0x5f   :  { %516 = vmatprep.subr.bf16.mxu0 %v669_v0 }
  0x60   :  { %497 = vmatpush3.bf16.msra.mxu1 %v496_v20 }
  0x61   :  { %498 = vmatprep.subr.bf16.mxu1 %v669_v0 }
  0x62   :  { %518 = vmatpush3.bf16.msra.mxu0 %v517_v41 }
  0x63   :  { %519 = vmatprep.subr.bf16.mxu0 %v669_v0 }
  0x64   :  { %500 = vmatpush3.bf16.msra.mxu1 %v499_v23 }
  0x65   :  { %501 = vmatprep.subr.bf16.mxu1 %v669_v0 }
  0x66   :  { %521 = vmatpush3.bf16.msra.mxu0 %v520_v44 }
  0x67   :  { %522 = vmatprep.subr.bf16.mxu0 %v669_v0 }
  0x68   :  { %503 = vmatpush3.bf16.msra.mxu1 %v502_v26 }
  0x69   :  { %504 = vmatprep.subr.bf16.mxu1 %v669_v0 }
  0x6a   :  { %524 = vmatpush3.bf16.msra.mxu0 %v523_v47 }
  0x6b   :  { %525 = vmatprep.subr.bf16.mxu0 %v669_v0 }
  0x6c   :  { %506 = vmatpush3.bf16.msra.mxu1 %v505_v29 }
  0x6e   :  { %527 = vmatpush3.bf16.msra.mxu0 %v526_v50 }
  0x6f   :  { %528 = vmatprep.subr.bf16.mxu0 %v669_v0  ;;  %v365_v0 = vld [vmem:[%s818_s4 + $0x2] ss:$0 sm:$0xff] }
  0x72   :  { %530 = vmatpush3.bf16.msra.mxu0 %v529_v58 }
 0x126   :  { %v156_v52 = vpop.f32.mrb[0].mxu0 }
 0x127   :  { %v157_v53 = vadd.f32 %v362_v51, %v156_v52  ;;  %v409_v54 = vpop.f32.mrb[1].mxu0 }
 0x129   :  { %v160_v55 = vmax.f32 %v157_v53, 0.0 }
 0x12b   :  { %443 = vmatmul.mubr.f32.vlgmr.msra.gmra.mrb[0].mxu1 %v160_v55 }
 0x1fe   :  { %v247_v60 = vpop.f32.mrb[0].mxu1 }
 0x1ff   :  { %v248_v61 = vadd.f32 %v364_v59, %v247_v60  ;;  %v444_v62 = vpop.f32.mrb[1].mxu1 }
 0x201   :  { %v251_v63 = vmax.f32 %v248_v61, 0.0 }
 0x203   :  { %478 = vmatmul.mubr.f32.vlgmr.msra.gmra.mrb[2].mxu0 %v251_v63 }
 0x2d6   :  { %v338_v1 = vpop.f32.mrb[2].mxu0 }
 0x2d7   :  { %v339_v2 = vadd.f32 %v365_v0, %v338_v1  ;;  %v479_v3 = vpop.f32.mrb[3].mxu0 }
 0x2d9   :  { %342 = vst [vmem:[#allocation10] sm:$0xff] %v339_v2 }
 0x2da   :  { %347 = vsyncadd [#allocation4], 64  ;;  %s672_s24 = smov [#allocation10]  }
 0x2db   :  { %s348_s25 = sshll.u32 %s672_s24, 4  ;;  %s349_s25 = int_to_ptr.vmem [resolvable:$true] %s348_s25 }
 0x2dc   :  { %s631_s26 = scalar_lea.vmem %s349_s25, 64  ;;  %s635_s27 = scalar_lea.vmem %s349_s25, 128 }
 0x2dd   :  { %p632_p4 = scmp.ne.s32.totalorder %s349_s25, %s631_s26  ;;  %p636_p5 = scmp.lt.s32.totalorder %s349_s25, %s349_s25 }
 0x2de   :  { %p637_p6 = scmp.lt.s32.totalorder %s635_s27, %s631_s26 }
 0x2e0   :  { %p638_p7 = por %p637_p6, %p636_p5 }
 0x2e2   :  { %p639_p8 = pnand %p638_p7, %p632_p4 }
 0x2e4   :  { %642 = shalt.err (!%p639_p8)
}
 0x2e5   :  { %s643_s4 = scalar_lea.hbm %s819_s5, 64 }
 0x2e6   :  { %p644_p9 = scmp.ne.s32.totalorder %s819_s5, %s643_s4  ;;  %p647_p10 = scmp.lt.u32.totalorder %s643_s4, %s819_s5 }
 0x2e8   :  { %p649_p11 = pnand %p647_p10, %p644_p9 }
 0x2ea   :  { %652 = shalt.err (!%p649_p11)
}
 0x2eb   :  { %354 = dma.vmem_to_hbm [thread:$0]  %s349_s25, 64, %s819_s5, [#allocation4], %s665_s17, %s665_s17, %s666_s18  }
 0x2ec   :  { %659 = dma.done.wait [#allocation4], 128  }
 0x2ed   :  { %660 = vsyncadd [#allocation4], 4294967168 }
 0x2ee   :  { %358 = vsyncpa [#allocation3], 1 }
 0x2ef   :  { %359 = vsyncpa [#allocation6], 1 }
 0x2f0   :  { %360 = vsyncpa [#allocation9], 1 }
 0x2f1   :  { %361 = vsyncpa [#allocation4], 1 }

</bundles_post_ra>
